<compile_context>
chip_gen: v5e
topology: v5e:2x2
jax: 0.10.0
libtpu: 0.0.40
codegen_flags: <defaults>
</compile_context>

<pallas_src>
import math
import functools

import jax
import jax.numpy as jnp
from jax.experimental import pallas as pl
from jax.experimental.pallas import tpu as pltpu


# ---------------------------------------------------------------------------
# Parameter setup (identical math to the PyTorch __init__)
# ---------------------------------------------------------------------------
def make_positional_table(d_model: int, max_len: int = 5000, dtype=jnp.float32):
    """Returns the pe buffer with the same shape as PyTorch: [max_len, 1, d_model]."""
    position = jnp.arange(max_len, dtype=jnp.float32)[:, None]                   # (L, 1)
    div_term = jnp.exp(
        jnp.arange(0, d_model, 2, dtype=jnp.float32) * (-math.log(10000.0) / d_model)
    )                                                                            # (D/2,)
    pe = jnp.zeros((max_len, 1, d_model), dtype=jnp.float32)
    pe = pe.at[:, 0, 0::2].set(jnp.sin(position * div_term))
    pe = pe.at[:, 0, 1::2].set(jnp.cos(position * div_term))
    return pe.astype(dtype)


# ---------------------------------------------------------------------------
# Kernels
# ---------------------------------------------------------------------------
def _add_pe(x_ref, pe_ref):
    x = x_ref[...]                        # (TS, B, D) or (TS, D)
    pe = pe_ref[...].astype(x.dtype)      # (TS, 1, D); compute in the input dtype
    if x.ndim == 2:                       # flattened batch==1 fast path
        pe = pe[:, 0, :]                  # (TS, D)
    return x + pe                         # broadcasts over batch when 3-D


def _posenc_eval_kernel(x_ref, pe_ref, o_ref):
    o_ref[...] = _add_pe(x_ref, pe_ref).astype(o_ref.dtype)


def _posenc_train_kernel(x_ref, pe_ref, u_ref, o_ref, *, dropout_p, inv_keep):
    y = _add_pe(x_ref, pe_ref)
    keep = u_ref[...] >= jnp.float32(dropout_p)          # P(keep) = 1 - p
    y = jnp.where(keep, y * jnp.asarray(inv_keep, y.dtype), jnp.zeros_like(y))
    o_ref[...] = y.astype(o_ref.dtype)


# ---------------------------------------------------------------------------
# Tiling helpers
# ---------------------------------------------------------------------------
def _round_up(n, m):
    return -(-n // m) * m


def _sublanes(dtype):
    return max(8, 32 // jnp.dtype(dtype).itemsize)


def _padded_block_bytes(block_shape, dtype):
    """VMEM bytes of one block after (sublane, lane) padding of the last two dims."""
    bs = [int(d) for d in block_shape]
    lead = 1
    for d in bs[:-2]:
        lead *= d
    sub, lane = (bs[-2], bs[-1]) if len(bs) >= 2 else (1, bs[-1])
    return lead * _round_up(sub, _sublanes(dtype)) * _round_up(lane, 128) * jnp.dtype(dtype).itemsize


def _divisors(n):
    ds, i = set(), 1
    while i * i <= n:
        if n % i == 0:
            ds.add(i)
            ds.add(n // i)
        i += 1
    return sorted(ds)


_TARGET_STEP_BYTES = 6 << 20    # padded VMEM payload per grid step (x + out [+ mask] blocks)
_VMEM_LIMIT_FLOOR = 16 << 20
_VMEM_LIMIT_CAP = 48 << 20      # stay comfortably under v7x's 64 MiB physical VMEM


# ---------------------------------------------------------------------------
# Wrapper
# ---------------------------------------------------------------------------
def positional_encoding(x, pe, *, dropout_p=0.1, training=False, rng_key=None,
                        tile_seq=None):
    """out = dropout(x + pe[:S]).   x: [S, B, D], pe: [max_len, 1, D]."""
    S, B, D = x.shape
    if pe.ndim != 3 or pe.shape[1] != 1 or pe.shape[2] != D or pe.shape[0] < S:
        raise ValueError(f"pe shape {pe.shape} incompatible with x shape {x.shape}")

    dropout_p = float(dropout_p)
    use_dropout = bool(training) and dropout_p > 0.0
    if use_dropout and dropout_p >= 1.0:
        return jnp.zeros_like(x)
    if use_dropout and rng_key is None:
        raise ValueError("rng_key is required when training with dropout_p > 0")

    # Portable dropout mask source (hardware PRNG is not available in interpret
    # mode): uniforms are generated by XLA and streamed through the kernel.
    u = jax.random.uniform(rng_key, (S, B, D), dtype=jnp.float32) if use_dropout else None

    itemsize = jnp.dtype(x.dtype).itemsize
    flatten = (B == 1)   # batch==1: use dense (tile_seq, D) blocks instead of (1, D) slabs

    def _row_bytes(flat):
        if flat:
            rx = _round_up(D, 128) * itemsize
            ru = _round_up(D, 128) * 4
        else:
            rx = _round_up(B, _sublanes(x.dtype)) * _round_up(D, 128) * itemsize
            ru = _round_up(B, 8) * _round_up(D, 128) * 4
        return 2 * rx + (ru if use_dropout else 0)

    divs = _divisors(S)
    if tile_seq is not None:
        if S % tile_seq:
            raise ValueError("seq_len must be divisible by tile_seq")
        tile = int(tile_seq)
        if flatten and not (tile % 8 == 0 or tile == S):
            flatten = False                       # keep block shapes TPU-legal
    else:
        tile = None
        if flatten:
            cap = max(1, min(S, _TARGET_STEP_BYTES // _row_bytes(True)))
            cand = [d for d in divs if d <= cap and (d % 8 == 0 or d == S)]
            if cand:
                tile = max(cand)
            elif S * _row_bytes(True) <= 2 * _TARGET_STEP_BYTES:
                tile = S
            else:
                flatten = False                   # fall back to the always-legal 3-D layout
        if not flatten:
            cap = max(1, min(S, _TARGET_STEP_BYTES // _row_bytes(False)))
            tile = max(d for d in divs if d <= cap)

    grid = (S // tile,)

    if flatten:
        x_in = x.reshape(S, D)                    # contiguous reshape: no HBM copy
        u_in = u.reshape(S, D) if use_dropout else None
        data_spec = pl.BlockSpec((tile, D), lambda i: (i, 0))
        x_block = (tile, D)
    else:
        x_in = x
        u_in = u
        data_spec = pl.BlockSpec((tile, B, D), lambda i: (i, 0, 0))
        x_block = (tile, B, D)

    # pe keeps its PyTorch buffer shape; BlockSpec picks the needed rows
    # (last two block dims equal the array dims -> legal for any tile/seq_len).
    pe_spec = pl.BlockSpec((tile, 1, D), lambda i: (i, 0, 0))

    # Explicit VMEM budget: double-buffered x/out/mask blocks + pe blocks + margin.
    step_bytes = 2 * _padded_block_bytes(x_block, x.dtype)
    if use_dropout:
        step_bytes += _padded_block_bytes(x_block, jnp.float32)
    vmem_limit = 2 * step_bytes + 2 * _padded_block_bytes((tile, 1, D), pe.dtype) + (4 << 20)
    vmem_limit = int(min(max(vmem_limit, _VMEM_LIMIT_FLOOR), _VMEM_LIMIT_CAP))

    compiler_params = pltpu.CompilerParams(
        dimension_semantics=("parallel",),        # seq tiles are independent
        vmem_limit_bytes=vmem_limit,
    )

    if use_dropout:
        kernel = functools.partial(
            _posenc_train_kernel,
            dropout_p=dropout_p,
            inv_keep=1.0 / (1.0 - dropout_p),
        )
        in_specs = [data_spec, pe_spec, data_spec]
        operands = (x_in, pe, u_in)
    else:
        kernel = _posenc_eval_kernel
        in_specs = [data_spec, pe_spec]
        operands = (x_in, pe)

    out = pl.pallas_call(
        kernel,
        out_shape=jax.ShapeDtypeStruct(x_in.shape, x.dtype),
        grid=grid,
        in_specs=in_specs,
        out_specs=data_spec,
        compiler_params=compiler_params,
    )(*operands)

    return out.reshape(S, B, D)


# ---------------------------------------------------------------------------
# Self-test
# ---------------------------------------------------------------------------
if __name__ == "__main__":
    SEQ, BATCH, D_MODEL = 8, 4, 32
    MAX_LEN = 64  # PyTorch default is 5000; 64 is enough for this test

    key = jax.random.PRNGKey(0)
    x_key, drop_key = jax.random.split(key)
    x = jax.random.normal(x_key, (SEQ, BATCH, D_MODEL), dtype=jnp.float32)
    pe = make_positional_table(D_MODEL, MAX_LEN)

    # Eval mode (dropout = identity): exact numerics vs. JAX reference.
    out_eval = positional_encoding(x, pe, dropout_p=0.1, training=False)
    jax.block_until_ready(out_eval)
    ref = x + pe[:SEQ]
    assert out_eval.shape == x.shape
    assert jnp.allclose(out_eval, ref, atol=1e-6, rtol=1e-6), "eval-mode mismatch"

    # batch == 1 fast path (flattened [S, D] blocks).
    x1 = x[:, :1, :]
    out1 = positional_encoding(x1, pe, dropout_p=0.1, training=False)
    jax.block_until_ready(out1)
    assert jnp.allclose(out1, x1 + pe[:SEQ], atol=1e-6, rtol=1e-6), "B=1 path mismatch"

    # Training mode: inverted dropout, exactly reproducible from the rng key.
    p = 0.1
    out_train = positional_encoding(x, pe, dropout_p=p, training=True, rng_key=drop_key)
    jax.block_until_ready(out_train)
    u = jax.random.uniform(drop_key, (SEQ, BATCH, D_MODEL), dtype=jnp.float32)
    keep = u >= jnp.float32(p)
    ref_train = jnp.where(keep, ref * jnp.asarray(1.0 / (1.0 - p), jnp.float32), 0.0)
    assert jnp.allclose(out_train, ref_train, atol=1e-6, rtol=1e-6), "train-mode mismatch"

    print("KERNEL_OK")
</pallas_src>

<mosaic_0001>
module attributes {stable_mosaic.version = 11 : i64} {
  func.func @_posenc_eval_kernel(%arg0: i32, %arg1: memref<8x4x32xf32, #tpu.memory_space<vmem>>, %arg2: memref<8x1x32xf32, #tpu.memory_space<vmem>>, %arg3: memref<8x4x32xf32, #tpu.memory_space<vmem>>) attributes {dimension_semantics = [#tpu.dimension_semantics<parallel>], iteration_bounds = array<i64: 1>, scalar_prefetch = 0 : i64, scratch_operands = 0 : i64, tpu.core_type = #tpu.core_type<tc>, window_params = [{transform_indices = @transform_0, window_bounds = array<i64: 8, 4, 32>}, {transform_indices = @transform_1, window_bounds = array<i64: 8, 1, 32>}, {transform_indices = @transform_2, window_bounds = array<i64: 8, 4, 32>}]} {
    %c0 = arith.constant 0 : index
    %c0_0 = arith.constant 0 : index
    %c0_1 = arith.constant 0 : index
    %0 = vector.load %arg1[%c0, %c0_0, %c0_1] : memref<8x4x32xf32, #tpu.memory_space<vmem>>, vector<8x4x32xf32>
    %c0_2 = arith.constant 0 : index
    %c0_3 = arith.constant 0 : index
    %c0_4 = arith.constant 0 : index
    %1 = vector.load %arg2[%c0_2, %c0_3, %c0_4] : memref<8x1x32xf32, #tpu.memory_space<vmem>>, vector<8x1x32xf32>
    %2 = vector.broadcast %1 : vector<8x1x32xf32> to vector<8x4x32xf32>
    %3 = arith.addf %0, %2 : vector<8x4x32xf32>
    %c0_5 = arith.constant 0 : index
    %c0_6 = arith.constant 0 : index
    %c0_7 = arith.constant 0 : index
    %4 = vector.load %arg3[%c0_5, %c0_6, %c0_7] : memref<8x4x32xf32, #tpu.memory_space<vmem>>, vector<8x4x32xf32>
    tpu.vector_store %arg3[%c0_5, %c0_6, %c0_7], %3 {strides = array<i32>} : memref<8x4x32xf32, #tpu.memory_space<vmem>>, vector<8x4x32xf32>,
    return
  }
  func.func @transform_0(%arg0: i32) -> (i32, i32, i32) {
    %c0_i32 = arith.constant 0 : i32
    %c0_i32_0 = arith.constant 0 : i32
    %c0_i32_1 = arith.constant 0 : i32
    return %arg0, %c0_i32, %c0_i32_0 : i32, i32, i32
  }
  func.func @transform_1(%arg0: i32) -> (i32, i32, i32) {
    %c0_i32 = arith.constant 0 : i32
    %c0_i32_0 = arith.constant 0 : i32
    %c0_i32_1 = arith.constant 0 : i32
    return %arg0, %c0_i32, %c0_i32_0 : i32, i32, i32
  }
  func.func @transform_2(%arg0: i32) -> (i32, i32, i32) {
    %c0_i32 = arith.constant 0 : i32
    %c0_i32_0 = arith.constant 0 : i32
    %c0_i32_1 = arith.constant 0 : i32
    return %arg0, %c0_i32, %c0_i32_0 : i32, i32, i32
  }
}

</mosaic_0001>

<bundles_post_ra>
// kernel: tpu_custom_call.1
= control target key start
LH: loop header
LB: loop body
LE: loop exit
PB: predicated region body
PF: predicated region fallthrough
CT: control target
= control target key end

     0   :  { %vm60_vm0 = vcmask 257024   ;;  %s201_s0 = inlined_call_operand.vmem [shape: f32[8,4,32], index: 0, kind: input, shape index: {}]   ;;  %s202_s1 = inlined_call_operand.vmem [shape: f32[64,1,32], index: 1, kind: input, shape index: {}]   ;;  %s203_s2 = inlined_call_operand.hbm [shape: f32[8,4,32], index: 2, kind: output, shape index: {}]  }
   0x1   :  { %v12_v0 = vld [vmem:[%s201_s0] sm:$0xf]  ;;  %v13_v2 = vld [vmem:[%s201_s0 + $0x4] sm:$0xf]  ;;  %v14_v5 = vld [vmem:[%s201_s0 + $0x8] sm:$0xf] }
   0x2   :  { %v90_v1 = vld [vmem:[%s202_s1] ss:$0 sm:$0xff]  ;;  %v91_v4 = vld [vmem:[%s202_s1 + $0x1] ss:$0 sm:$0xff]  ;;  %v92_v6 = vld [vmem:[%s202_s1 + $0x2] ss:$0 sm:$0xff] }
   0x3   :  { %v52_v3 = vadd.f32 %v90_v1, %v12_v0  ;;  %v15_v7 = vld [vmem:[%s201_s0 + $0xc] sm:$0xf]  ;;  %v53_v8 = vadd.f32 %v91_v4, %v13_v2  ;;  %v93_v9 = vld [vmem:[%s202_s1 + $0x3] ss:$0 sm:$0xff]  ;;  %v16_v10 = vld [vmem:[%s201_s0 + $0x10] sm:$0xf]  ;;  %v54_v11 = vadd.f32 %v92_v6, %v14_v5 }
   0x4   :  { %v94_v12 = vld [vmem:[%s202_s1 + $0x4] ss:$0 sm:$0xff]  ;;  %v17_v13 = vld [vmem:[%s201_s0 + $0x14] sm:$0xf]  ;;  %v55_v14 = vadd.f32 %v93_v9, %v15_v7  ;;  %v95_v15 = vld [vmem:[%s202_s1 + $0x5] ss:$0 sm:$0xff] }
   0x5   :  { %61 = vst.msk [vmem:[#allocation2] sm:$0xf] %vm60_vm0, %v52_v3  ;;  %v56_v16 = vadd.f32 %v94_v12, %v16_v10  ;;  %v18_v17 = vld [vmem:[%s201_s0 + $0x18] sm:$0xf]  ;;  %v57_v18 = vadd.f32 %v95_v15, %v17_v13  ;;  %v96_v19 = vld [vmem:[%s202_s1 + $0x6] ss:$0 sm:$0xff] }
   0x6   :  { %62 = vst.msk [vmem:[#allocation2 + $0x4] sm:$0xf] %vm60_vm0, %v53_v8  ;;  %v19_v20 = vld [vmem:[%s201_s0 + $0x1c] sm:$0xf]  ;;  %v97_v21 = vld [vmem:[%s202_s1 + $0x7] ss:$0 sm:$0xff]  ;;  %v58_v22 = vadd.f32 %v96_v19, %v18_v17 }
   0x7   :  { %63 = vst.msk [vmem:[#allocation2 + $0x8] sm:$0xf] %vm60_vm0, %v54_v11 }
   0x8   :  { %64 = vst.msk [vmem:[#allocation2 + $0xc] sm:$0xf] %vm60_vm0, %v55_v14 }
   0x9   :  { %65 = vst.msk [vmem:[#allocation2 + $0x10] sm:$0xf] %vm60_vm0, %v56_v16 }
   0xa   :  { %66 = vst.msk [vmem:[#allocation2 + $0x14] sm:$0xf] %vm60_vm0, %v57_v18 }
   0xb   :  { %7 = vsyncpa [#allocation3], 0  ;;  %s124_s13 = smov [#allocation2]   ;;  %s75_s17 = sshll.u32 %s203_s2, 4  ;;  %v59_v23 = vadd.f32 %v97_v21, %v19_v20  ;;  %67 = vst.msk [vmem:[#allocation2 + $0x18] sm:$0xf] %vm60_vm0, %v58_v22  ;;  %s76_s17 = int_to_ptr.hbm [resolvable:$true] %s75_s17 }
   0xc   :  { %s73_s14 = sshll.u32 %s124_s13, 4  ;;  %s125_s0 = smov 64   ;;  %s74_s14 = int_to_ptr.vmem [resolvable:$true] %s73_s14 }
   0xd   :  { %68 = vst.msk [vmem:[#allocation2 + $0x1c] sm:$0xf] %vm60_vm0, %v59_v23  ;;  %s126_s18 = smov 4  }
   0xe   :  { %81 = dma.vmem_to_hbm [thread:$0]  %s74_s14, 512, %s76_s17, [#allocation3], %s125_s0, %s125_s0, %s126_s18  }
   0xf   :  { %122 = dma.done.wait [#allocation3], 512  }
  0x10   :  { %123 = vsyncadd [#allocation3], 4294966784 }
  0x11   :  { %86 = vsyncpa [#allocation3], 1 }

</bundles_post_ra>
